<compile_context>
chip_gen: v7x
topology: tpu7x:2x2x1
jax: 0.10.0
libtpu: 0.0.40
codegen_flags: <defaults>
</compile_context>

<pallas_src>
import jax
import jax.numpy as jnp
from jax import lax
from jax.experimental import pallas as pl
from jax.experimental.pallas import tpu as pltpu


# ---------------------------------------------------------------------------
# Stage 1: z = adj @ (x @ W1) plus every i/j-invariant per-row term. O(N*D).
# ---------------------------------------------------------------------------
def _stage1_kernel(x_ref, w1_ref, adj_ref, w3b_ref, v2a_ref, v2b_ref,
                   z_ref, zs_ref, sa_ref, sb_ref):
    h = jnp.dot(x_ref[...], w1_ref[...], preferred_element_type=jnp.float32)
    z = jnp.dot(adj_ref[...], h, preferred_element_type=jnp.float32)
    z_ref[...] = z
    zs_ref[...] = z * w3b_ref[...]                     # (N, D) * (1, D)
    rz = jnp.maximum(z, 0.0)
    sa_ref[...] = jnp.dot(rz, v2a_ref[...], preferred_element_type=jnp.float32)
    sb_ref[...] = jnp.dot(rz, v2b_ref[...], preferred_element_type=jnp.float32)


# ---------------------------------------------------------------------------
# Stage 2: pairwise scores for a tile of i rows vs all j rows. O(N^2 * D).
# ---------------------------------------------------------------------------
def _pairwise_kernel(zs_ref, sa_ref, z_ref, sbt_ref, out_ref):
    # zs_ref : (TI, D)  rows of z*w3b for this i-tile
    # sa_ref : (TI, 1)  precomputed relu(z[i]) @ (W2a@W3a)
    # z_ref  : (N, D)   resident j-side operand (constant index_map)
    # sbt_ref: (1, N)   precomputed relu(z[j]) @ (W2b@W3a), already a row
    sm = lax.dot_general(zs_ref[...], z_ref[...],
                         dimension_numbers=(((1,), (1,)), ((), ())),
                         preferred_element_type=jnp.float32)      # (TI, N)
    score = sm + sa_ref[...] + sbt_ref[...]
    # sigmoid(s) = 1 / (1 + exp(-s)); exp + approx reciprocal both land on EUP.
    out_ref[...] = pl.reciprocal(1.0 + jnp.exp(-score),
                                 approx=True).astype(out_ref.dtype)


def _pick_tile_i(n, d, max_tile=256, vmem_budget_bytes=12 << 20):
    """Largest divisor of n (<= max_tile) whose working set fits the budget."""
    divisors = [t for t in range(1, n + 1) if n % t == 0 and t <= max_tile]

    def footprint(t):  # f32 bytes: double-buffered tiles + resident z, sb^T
        return 4 * (2 * t * n + 2 * t * d + 2 * t + n * d + n)

    for t in reversed(divisors):
        if footprint(t) <= vmem_budget_bytes:
            return t
    return divisors[0]


def whole_layer(x, adj, w1, w2, w3, *, tile_i=None, mxu_dtype=jnp.float32):
    N, _ = x.shape
    D = w1.shape[1]

    # Parameter plumbing (done once, outside the hot path):
    #   fold W2 @ W3[:D] -> two (D, 1) vectors; split W3[D:] as a (1, D) row.
    w2a, w2b = w2[:D], w2[D:]
    w3a, w3b = w3[:D], w3[D:].reshape(1, D)
    v2a = w2a @ w3a                                    # (D, 1)
    v2b = w2b @ w3a                                    # (D, 1)

    # ---- Stage 1 ----------------------------------------------------------
    full = lambda shape: pl.BlockSpec(shape, lambda i: (0,) * len(shape))
    z, zs, sa, sb = pl.pallas_call(
        _stage1_kernel,
        out_shape=(jax.ShapeDtypeStruct((N, D), jnp.float32),
                   jax.ShapeDtypeStruct((N, D), jnp.float32),
                   jax.ShapeDtypeStruct((N, 1), jnp.float32),
                   jax.ShapeDtypeStruct((N, 1), jnp.float32)),
        grid_spec=pltpu.PrefetchScalarGridSpec(
            num_scalar_prefetch=0,
            grid=(1,),
            in_specs=[full(x.shape), full(w1.shape), full(adj.shape),
                      full(w3b.shape), full(v2a.shape), full(v2b.shape)],
            out_specs=(full((N, D)), full((N, D)),
                       full((N, 1)), full((N, 1))),
        ),
        compiler_params=pltpu.CompilerParams(
            dimension_semantics=("arbitrary",)),
    )(x, w1, adj, w3b, v2a, v2b)

    sbt = sb.reshape(1, N)          # row vector for the column-broadcast add

    # Optional bf16 MXU operands (v6e/v7x); default f32 keeps bit-level parity.
    if mxu_dtype != jnp.float32:
        z = z.astype(mxu_dtype)
        zs = zs.astype(mxu_dtype)

    # ---- Stage 2 ----------------------------------------------------------
    if tile_i is None:
        tile_i = _pick_tile_i(N, D)
    assert N % tile_i == 0

    out = pl.pallas_call(
        _pairwise_kernel,
        out_shape=jax.ShapeDtypeStruct((N, N), jnp.float32),
        grid_spec=pltpu.PrefetchScalarGridSpec(
            num_scalar_prefetch=0,
            grid=(N // tile_i,),
            in_specs=[pl.BlockSpec((tile_i, D), lambda i: (i, 0)),   # zs tile
                      pl.BlockSpec((tile_i, 1), lambda i: (i, 0)),   # sa tile
                      pl.BlockSpec((N, D), lambda i: (0, 0)),        # z (resident)
                      pl.BlockSpec((1, N), lambda i: (0, 0))],       # sb^T (resident)
            out_specs=pl.BlockSpec((tile_i, N), lambda i: (i, 0)),
        ),
        compiler_params=pltpu.CompilerParams(
            dimension_semantics=("parallel",)),   # i-tiles independent -> 2 TCs on v7x
    )(zs, sa, z, sbt)
    return out


# ---------------------------------------------------------------------------
# Pure-JAX mirror of the PyTorch forward (literal ops) + init helpers.
# ---------------------------------------------------------------------------
def reference(x, adj, w1, w2, w3):
    N = x.shape[0]
    h = x @ w1
    z = adj @ h
    z1 = jnp.repeat(z, N, axis=0)       # z.repeat(1, N).reshape(-1, D)
    z2 = jnp.tile(z, (N, 1))            # z.repeat(N, 1).reshape(-1, D)
    z_pair = jax.nn.relu(jnp.concatenate([z1, z2], axis=1)) @ w2
    score = jnp.concatenate([z_pair, z1 * z2], axis=1) @ w3
    return jax.nn.sigmoid(score.reshape(N, N))


def xavier_uniform(key, shape):
    fan_in, fan_out = shape
    a = (6.0 / (fan_in + fan_out)) ** 0.5
    return jax.random.uniform(key, shape, jnp.float32, -a, a)


def kaiming_uniform_sigmoid(key, shape):
    # kaiming_uniform_(a=1, nonlinearity='sigmoid'): gain=1, bound=sqrt(3/fan_in)
    fan_in = shape[1]
    bound = (3.0 / fan_in) ** 0.5
    return jax.random.uniform(key, shape, jnp.float32, -bound, bound)


if __name__ == "__main__":
    N = 16            # node_size
    input_dim = 64
    output_dim = 32

    key = jax.random.PRNGKey(0)
    k_x, k_adj, k_w1, k_w2, k_w3 = jax.random.split(key, 5)

    x = jax.random.normal(k_x, (N, input_dim), jnp.float32)
    adj = jax.random.uniform(k_adj, (N, N), jnp.float32)          # dense adjacency
    w1 = xavier_uniform(k_w1, (input_dim, output_dim))            # self.weight
    w2 = xavier_uniform(k_w2, (2 * output_dim, output_dim))       # self.weight_two
    w3 = kaiming_uniform_sigmoid(k_w3, (2 * output_dim, 1))       # self.weight_three

    out = jax.block_until_ready(whole_layer(x, adj, w1, w2, w3))
    ref = reference(x, adj, w1, w2, w3)

    assert out.shape == (N, N)
    # Tolerance loosened slightly: W2@W3a fold changes rounding order and the
    # sigmoid divide uses the EUP approximate reciprocal.
    err = float(jnp.max(jnp.abs(out - ref)))
    assert jnp.allclose(out, ref, atol=2e-3, rtol=2e-3), f"max abs err = {err}"
    print("KERNEL_OK")
</pallas_src>

<mosaic_0001>
module attributes {stable_mosaic.version = 11 : i64} {
  func.func @_stage1_kernel(%arg0: i32, %arg1: memref<16x64xf32, #tpu.memory_space<vmem>>, %arg2: memref<64x32xf32, #tpu.memory_space<vmem>>, %arg3: memref<16x16xf32, #tpu.memory_space<vmem>>, %arg4: memref<1x32xf32, #tpu.memory_space<vmem>>, %arg5: memref<32x1xf32, #tpu.memory_space<vmem>>, %arg6: memref<32x1xf32, #tpu.memory_space<vmem>>, %arg7: memref<16x32xf32, #tpu.memory_space<vmem>>, %arg8: memref<16x32xf32, #tpu.memory_space<vmem>>, %arg9: memref<16x1xf32, #tpu.memory_space<vmem>>, %arg10: memref<16x1xf32, #tpu.memory_space<vmem>>) attributes {dimension_semantics = [#tpu.dimension_semantics<arbitrary>], iteration_bounds = array<i64: 1>, scalar_prefetch = 0 : i64, scratch_operands = 0 : i64, tpu.core_type = #tpu.core_type<tc>, window_params = [{pipeline_mode = #tpu.pipeline_mode<synchronous>, transform_indices = @transform_0, window_bounds = array<i64: 16, 64>}, {pipeline_mode = #tpu.pipeline_mode<synchronous>, transform_indices = @transform_1, window_bounds = array<i64: 64, 32>}, {pipeline_mode = #tpu.pipeline_mode<synchronous>, transform_indices = @transform_2, window_bounds = array<i64: 16, 16>}, {pipeline_mode = #tpu.pipeline_mode<synchronous>, transform_indices = @transform_3, window_bounds = array<i64: 1, 32>}, {pipeline_mode = #tpu.pipeline_mode<synchronous>, transform_indices = @transform_4, window_bounds = array<i64: 32, 1>}, {pipeline_mode = #tpu.pipeline_mode<synchronous>, transform_indices = @transform_5, window_bounds = array<i64: 32, 1>}, {pipeline_mode = #tpu.pipeline_mode<synchronous>, transform_indices = @transform_6, window_bounds = array<i64: 16, 32>}, {pipeline_mode = #tpu.pipeline_mode<synchronous>, transform_indices = @transform_7, window_bounds = array<i64: 16, 32>}, {pipeline_mode = #tpu.pipeline_mode<synchronous>, transform_indices = @transform_8, window_bounds = array<i64: 16, 1>}, {pipeline_mode = #tpu.pipeline_mode<synchronous>, transform_indices = @transform_9, window_bounds = array<i64: 16, 1>}]} {
    %c0 = arith.constant 0 : index
    %c0_0 = arith.constant 0 : index
    %0 = vector.load %arg1[%c0, %c0_0] : memref<16x64xf32, #tpu.memory_space<vmem>>, vector<16x64xf32>
    %c0_1 = arith.constant 0 : index
    %c0_2 = arith.constant 0 : index
    %1 = vector.load %arg2[%c0_1, %c0_2] : memref<64x32xf32, #tpu.memory_space<vmem>>, vector<64x32xf32>
    %cst = arith.constant dense<0.000000e+00> : vector<16x32xf32>
    %2 = tpu.matmul %0, %1, %cst {dimension_numbers = #tpu.dot_dimension_numbers<[1], [0], [0], [1], [0, 0, 1, 1], [], []>} : vector<16x64xf32>, vector<64x32xf32>, vector<16x32xf32> -> vector<16x32xf32>
    %c0_3 = arith.constant 0 : index
    %c0_4 = arith.constant 0 : index
    %3 = vector.load %arg3[%c0_3, %c0_4] : memref<16x16xf32, #tpu.memory_space<vmem>>, vector<16x16xf32>
    %cst_5 = arith.constant dense<0.000000e+00> : vector<16x32xf32>
    %4 = tpu.matmul %3, %2, %cst_5 {dimension_numbers = #tpu.dot_dimension_numbers<[1], [0], [0], [1], [0, 0, 1, 1], [], []>} : vector<16x16xf32>, vector<16x32xf32>, vector<16x32xf32> -> vector<16x32xf32>
    %c0_6 = arith.constant 0 : index
    %c0_7 = arith.constant 0 : index
    %5 = vector.load %arg7[%c0_6, %c0_7] : memref<16x32xf32, #tpu.memory_space<vmem>>, vector<16x32xf32>
    tpu.vector_store %arg7[%c0_6, %c0_7], %4 {strides = array<i32>} : memref<16x32xf32, #tpu.memory_space<vmem>>, vector<16x32xf32>,
    %c0_8 = arith.constant 0 : index
    %c0_9 = arith.constant 0 : index
    %6 = vector.load %arg4[%c0_8, %c0_9] : memref<1x32xf32, #tpu.memory_space<vmem>>, vector<1x32xf32>
    %7 = vector.broadcast %6 : vector<1x32xf32> to vector<16x32xf32>
    %8 = arith.mulf %4, %7 : vector<16x32xf32>
    %c0_10 = arith.constant 0 : index
    %c0_11 = arith.constant 0 : index
    %9 = vector.load %arg8[%c0_10, %c0_11] : memref<16x32xf32, #tpu.memory_space<vmem>>, vector<16x32xf32>
    tpu.vector_store %arg8[%c0_10, %c0_11], %8 {strides = array<i32>} : memref<16x32xf32, #tpu.memory_space<vmem>>, vector<16x32xf32>,
    %cst_12 = arith.constant 0.000000e+00 : f32
    %10 = vector.broadcast %cst_12 : f32 to vector<16x32xf32>
    %11 = arith.maximumf %4, %10 : vector<16x32xf32>
    %c0_13 = arith.constant 0 : index
    %c0_14 = arith.constant 0 : index
    %12 = vector.load %arg5[%c0_13, %c0_14] : memref<32x1xf32, #tpu.memory_space<vmem>>, vector<32x1xf32>
    %cst_15 = arith.constant dense<0.000000e+00> : vector<16x1xf32>
    %13 = tpu.matmul %11, %12, %cst_15 {dimension_numbers = #tpu.dot_dimension_numbers<[1], [0], [0], [1], [0, 0, 1, 1], [], []>} : vector<16x32xf32>, vector<32x1xf32>, vector<16x1xf32> -> vector<16x1xf32>
    %c0_16 = arith.constant 0 : index
    %c0_17 = arith.constant 0 : index
    %14 = vector.load %arg9[%c0_16, %c0_17] : memref<16x1xf32, #tpu.memory_space<vmem>>, vector<16x1xf32>
    tpu.vector_store %arg9[%c0_16, %c0_17], %13 {strides = array<i32>} : memref<16x1xf32, #tpu.memory_space<vmem>>, vector<16x1xf32>,
    %c0_18 = arith.constant 0 : index
    %c0_19 = arith.constant 0 : index
    %15 = vector.load %arg6[%c0_18, %c0_19] : memref<32x1xf32, #tpu.memory_space<vmem>>, vector<32x1xf32>
    %cst_20 = arith.constant dense<0.000000e+00> : vector<16x1xf32>
    %16 = tpu.matmul %11, %15, %cst_20 {dimension_numbers = #tpu.dot_dimension_numbers<[1], [0], [0], [1], [0, 0, 1, 1], [], []>} : vector<16x32xf32>, vector<32x1xf32>, vector<16x1xf32> -> vector<16x1xf32>
    %c0_21 = arith.constant 0 : index
    %c0_22 = arith.constant 0 : index
    %17 = vector.load %arg10[%c0_21, %c0_22] : memref<16x1xf32, #tpu.memory_space<vmem>>, vector<16x1xf32>
    tpu.vector_store %arg10[%c0_21, %c0_22], %16 {strides = array<i32>} : memref<16x1xf32, #tpu.memory_space<vmem>>, vector<16x1xf32>,
    return
  }
  func.func @transform_0(%arg0: i32) -> (i32, i32) {
    %c0_i32 = arith.constant 0 : i32
    %c0_i32_0 = arith.constant 0 : i32
    %c0_i32_1 = arith.constant 0 : i32
    return %c0_i32, %c0_i32_0 : i32, i32
  }
  func.func @transform_1(%arg0: i32) -> (i32, i32) {
    %c0_i32 = arith.constant 0 : i32
    %c0_i32_0 = arith.constant 0 : i32
    %c0_i32_1 = arith.constant 0 : i32
    return %c0_i32, %c0_i32_0 : i32, i32
  }
  func.func @transform_2(%arg0: i32) -> (i32, i32) {
    %c0_i32 = arith.constant 0 : i32
    %c0_i32_0 = arith.constant 0 : i32
    %c0_i32_1 = arith.constant 0 : i32
    return %c0_i32, %c0_i32_0 : i32, i32
  }
  func.func @transform_3(%arg0: i32) -> (i32, i32) {
    %c0_i32 = arith.constant 0 : i32
    %c0_i32_0 = arith.constant 0 : i32
    %c0_i32_1 = arith.constant 0 : i32
    return %c0_i32, %c0_i32_0 : i32, i32
  }
  func.func @transform_4(%arg0: i32) -> (i32, i32) {
    %c0_i32 = arith.constant 0 : i32
    %c0_i32_0 = arith.constant 0 : i32
    %c0_i32_1 = arith.constant 0 : i32
    return %c0_i32, %c0_i32_0 : i32, i32
  }
  func.func @transform_5(%arg0: i32) -> (i32, i32) {
    %c0_i32 = arith.constant 0 : i32
    %c0_i32_0 = arith.constant 0 : i32
    %c0_i32_1 = arith.constant 0 : i32
    return %c0_i32, %c0_i32_0 : i32, i32
  }
  func.func @transform_6(%arg0: i32) -> (i32, i32) {
    %c0_i32 = arith.constant 0 : i32
    %c0_i32_0 = arith.constant 0 : i32
    %c0_i32_1 = arith.constant 0 : i32
    return %c0_i32, %c0_i32_0 : i32, i32
  }
  func.func @transform_7(%arg0: i32) -> (i32, i32) {
    %c0_i32 = arith.constant 0 : i32
    %c0_i32_0 = arith.constant 0 : i32
    %c0_i32_1 = arith.constant 0 : i32
    return %c0_i32, %c0_i32_0 : i32, i32
  }
  func.func @transform_8(%arg0: i32) -> (i32, i32) {
    %c0_i32 = arith.constant 0 : i32
    %c0_i32_0 = arith.constant 0 : i32
    %c0_i32_1 = arith.constant 0 : i32
    return %c0_i32, %c0_i32_0 : i32, i32
  }
  func.func @transform_9(%arg0: i32) -> (i32, i32) {
    %c0_i32 = arith.constant 0 : i32
    %c0_i32_0 = arith.constant 0 : i32
    %c0_i32_1 = arith.constant 0 : i32
    return %c0_i32, %c0_i32_0 : i32, i32
  }
}

</mosaic_0001>

<bundles_post_ra>
// kernel: tpu_custom_call.1
= control target key start
LH: loop header
LB: loop body
LE: loop exit
PB: predicated region body
PF: predicated region fallthrough
CT: control target
= control target key end

     0   :  { %15 = vsyncpa [#allocation3], 0  ;;  %vm39_vm0 = vcmask 523264   ;;  %s771_s0 = inlined_call_operand.vmem [shape: f32[16,64], index: 0, kind: input, shape index: {}]   ;;  %s772_s1 = inlined_call_operand.vmem [shape: f32[64,32], index: 1, kind: input, shape index: {}]   ;;  %s773_s2 = inlined_call_operand.vmem [shape: f32[16,16], index: 2, kind: input, shape index: {}]   ;;  %s774_s3 = inlined_call_operand.vmem [shape: f32[1,32], index: 3, kind: input, shape index: {}]   ;;  %s775_s4 = inlined_call_operand.vmem [shape: f32[32,1], index: 4, kind: input, shape index: {}]   ;;  %s776_s5 = inlined_call_operand.vmem [shape: f32[32,1], index: 5, kind: input, shape index: {}]   ;;  %s777_s6 = inlined_call_operand.hbm [shape: f32[16,32], index: 6, kind: output, shape index: {0}]   ;;  %s778_s7 = inlined_call_operand.hbm [shape: f32[16,32], index: 7, kind: output, shape index: {1}]   ;;  %s779_s8 = inlined_call_operand.vmem [shape: f32[16,1], index: 8, kind: output, shape index: {2}]   ;;  %s780_s9 = inlined_call_operand.vmem [shape: f32[16,1], index: 9, kind: output, shape index: {3}]  }
   0x1   :  { %v31_v0 = vld [vmem:[%s772_s1] sm:$0xff]  ;;  %v32_v1 = vld [vmem:[%s772_s1 + $0x8] sm:$0xff]  ;;  %v33_v2 = vld [vmem:[%s772_s1 + $0x10] sm:$0xff] }
   0x2   :  { %v513_v3 = vpack.c.bf16 %v32_v1, %v31_v0  ;;  %v34_v4 = vld [vmem:[%s772_s1 + $0x18] sm:$0xff]  ;;  %v35_v6 = vld [vmem:[%s772_s1 + $0x20] sm:$0xff]  ;;  %v36_v7 = vld [vmem:[%s772_s1 + $0x28] sm:$0xff] }
   0x3   :  { %v517_v5 = vpack.c.bf16 %v34_v4, %v33_v2  ;;  %v29_v8 = vld [vmem:[%s771_s0] sm:$0xff] }
   0x4   :  { %514 = vmatprep.subr.bf16.mxu0 %v513_v3  ;;  %481 = vmatprep.mubr.msk.f32.mxu0 %vm39_vm0, %v29_v8 }
   0x5   :  { %16 = vsyncpa [#allocation5], 0  ;;  %516 = vmatpush3.bf16.msra.mxu0 %v513_v3  ;;  %v521_v9 = vpack.c.bf16 %v36_v7, %v35_v6  ;;  %v37_v10 = vld [vmem:[%s772_s1 + $0x30] sm:$0xff]  ;;  %v38_v11 = vld [vmem:[%s772_s1 + $0x38] sm:$0xff]  ;;  %vm123_vm1 = vcmask 130048   ;;  %vm205_vm2 = vcmask 261120  }
   0x6   :  { %518 = vmatprep.subr.bf16.mxu0 %v517_v5  ;;  %v525_v12 = vpack.c.bf16 %v38_v11, %v37_v10  ;;  %v30_v13 = vld [vmem:[%s771_s0 + $0x8] sm:$0xff]  ;;  %v121_v14 = vld [vmem:[%s773_s2] sm:$0xff]  ;;  %v223_v22 = vld [vmem:[%s775_s4 + $0x10] sm:$0xff]  ;;  %s602_s26 = smov [#allocation4]  }
   0x7   :  { %488 = vmatprep.mubr.msk.f32.mxu1 %vm123_vm1, %v121_v14  ;;  %v221_v15 = vld [vmem:[%s775_s4] sm:$0xff]  ;;  %v222_v16 = vld [vmem:[%s775_s4 + $0x8] sm:$0xff]  ;;  %v224_v23 = vld [vmem:[%s775_s4 + $0x18] sm:$0xff]  ;;  %s407_s27 = sshll.u32 %s602_s26, 4  ;;  %s728_s27 = int_to_ptr.vmem [resolvable:$true] %s407_s27 }
   0x8   :  { %v533_v20 = vpack.c.bf16 %v222_v16, %v221_v15  ;;  %v122_v21 = vld [vmem:[%s773_s2 + $0x8] sm:$0xff]  ;;  %v537_v24 = vpack.c.bf16 %v224_v23, %v223_v22  ;;  %v309_v25 = vld [vmem:[%s776_s5] sm:$0xff]  ;;  %v311_v30 = vld [vmem:[%s776_s5 + $0x10] sm:$0xff] }
   0x9   :  { %520 = vmatpush3.bf16.msra.mxu0 %v517_v5  ;;  %v310_v26 = vld [vmem:[%s776_s5 + $0x8] sm:$0xff]  ;;  %v434_v28 = vld [vmem:[%s774_s3] ss:$0 sm:$0xff]  ;;  %v312_v31 = vld [vmem:[%s776_s5 + $0x18] sm:$0xff]  ;;  %s601_s3 = smov [#allocation2]  }
   0xa   :  { %522 = vmatprep.subr.bf16.mxu0 %v521_v9  ;;  %v541_v27 = vpack.c.bf16 %v310_v26, %v309_v25  ;;  %v545_v37 = vpack.c.bf16 %v312_v31, %v311_v30  ;;  %s395_s5 = sshll.u32 %s601_s3, 4  ;;  %s396_s5 = int_to_ptr.vmem [resolvable:$true] %s395_s5 }
   0xb   :  { %s553_s28 = scalar_lea.vmem %s396_s5, 256  ;;  %p558_p1 = scmp.lt.s32.totalorder %s396_s5, %s396_s5 }
   0xc   :  { %p554_p0 = scmp.ne.s32.totalorder %s396_s5, %s553_s28  ;;  %p559_p2 = scmp.lt.s32.totalorder %s553_s28, %s553_s28 }
   0xd   :  { %524 = vmatpush3.bf16.msra.mxu0 %v521_v9 }
   0xe   :  { %526 = vmatprep.subr.bf16.mxu0 %v525_v12  ;;  %p560_p3 = por %p559_p2, %p558_p1 }
  0x10   :  { %p561_p4 = pnand %p560_p3, %p554_p0 }
  0x11   :  { %528 = vmatpush3.bf16.msra.mxu0 %v525_v12 }
  0x14   :  { %482 = vmatmul.mubr.msk.f32.vlgmr.msra.gmra.mrb[0].mxu0 %vm39_vm0, %v30_v13 }
  0xe7   :  { %v483_v17 = vpop.f32.mrb[0].mxu0 }
  0xe8   :  { %v112_v18 = vpop.f32.mrb[1].mxu0 }
  0xe9   :  { %v529_v19 = vpack.c.bf16 %v483_v17, %v112_v18 }
  0xeb   :  { %530 = vmatprep.subr.bf16.mxu1 %v529_v19 }
  0xec   :  { %532 = vmatpush3.bf16.msra.mxu1 %v529_v19 }
  0xed   :  { %534 = vmatprep.subr.bf16.mxu1 %v533_v20 }
  0xef   :  { %489 = vmatmul.mubr.msk.f32.vlgmr.msra.gmra.mrb[0].mxu1 %vm123_vm1, %v122_v21 }
  0xf0   :  { %536 = vmatpush3.bf16.msra.mxu1 %v533_v20 }
  0xf1   :  { %538 = vmatprep.subr.bf16.mxu1 %v537_v24 }
  0xf4   :  { %540 = vmatpush3.bf16.msra.mxu1 %v537_v24 }
  0xf5   :  { %542 = vmatprep.subr.bf16.mxu1 %v541_v27 }
 0x1c2   :  { %v490_v29 = vpop.f32.mrb[0].mxu1 }
 0x1c3   :  { %207 = vst.msk [vmem:[#allocation2 + $0x8] sm:$0xff] %vm205_vm2, %v490_v29  ;;  %v216_v32 = vmul.f32 %v490_v29, %v434_v28  ;;  %v196_v33 = vpop.f32.mrb[1].mxu1  ;;  %v220_v36 = vmax.f32 %v490_v29, 0.0 }
 0x1c4   :  { %206 = vst.msk [vmem:[#allocation2] sm:$0xff] %vm205_vm2, %v196_v33  ;;  %v215_v34 = vmul.f32 %v434_v28, %v196_v33  ;;  %v219_v35 = vmax.f32 %v196_v33, 0.0 }
 0x1c5   :  { %218 = vst.msk [vmem:[#allocation4 + $0x8] sm:$0xff] %vm205_vm2, %v216_v32 }
 0x1c6   :  { %217 = vst.msk [vmem:[#allocation4] sm:$0xff] %vm205_vm2, %v215_v34  ;;  %499 = vmatprep.mubr.msk.f32.mxu1 %vm205_vm2, %v219_v35 }
 0x1c7   :  { %500 = vmatmul.mubr.msk.f32.vlgmr.msra.gmra.mrb[2].mxu1 %vm205_vm2, %v220_v36 }
 0x1c8   :  { %544 = vmatpush3.bf16.msra.mxu1 %v541_v27  ;;  %510 = vmatprep.mubr.msk.f32.mxu1 %vm205_vm2, %v219_v35 }
 0x1c9   :  { %546 = vmatprep.subr.bf16.mxu1 %v545_v37 }
 0x1cc   :  { %548 = vmatpush3.bf16.msra.mxu1 %v545_v37 }
 0x1cf   :  { %511 = vmatmul.mubr.msk.f32.vlgmr.msra.gmra.mrb[4].mxu1 %vm205_vm2, %v220_v36 }
 0x1d0   :  { %564 = shalt.err (!%p561_p4)
}
 0x1d1   :  { %s565_s10 = scalar_lea.hbm %s777_s6, 256 }
 0x1d2   :  { %p566_p5 = scmp.ne.s32.totalorder %s777_s6, %s565_s10  ;;  %p569_p6 = scmp.lt.u32.totalorder %s565_s10, %s777_s6 }
 0x1d4   :  { %p571_p7 = pnand %p569_p6, %p566_p5 }
 0x1d6   :  { %574 = shalt.err (!%p571_p7)
}
 0x1d7   :  { %s603_s13 = smov 128   ;;  %s604_s14 = smov 8  }
 0x1d8   :  { %401 = dma.vmem_to_hbm [thread:$0]  %s396_s5, 256, %s777_s6, [#allocation3], %s603_s13, %s603_s13, %s604_s14  }
 0x1d9   :  { %s575_s17 = scalar_lea.vmem %s728_s27, 256  ;;  %p580_p9 = scmp.lt.s32.totalorder %s728_s27, %s728_s27 }
 0x1da   :  { %p576_p8 = scmp.ne.s32.totalorder %s728_s27, %s575_s17  ;;  %p581_p10 = scmp.lt.s32.totalorder %s575_s17, %s575_s17 }
 0x1dc   :  { %p582_p11 = por %p581_p10, %p580_p9 }
 0x1de   :  { %p583_p12 = pnand %p582_p11, %p576_p8 }
 0x1e0   :  { %586 = shalt.err (!%p583_p12)
}
 0x1e1   :  { %s587_s20 = scalar_lea.hbm %s778_s7, 256 }
 0x1e2   :  { %p588_p13 = scmp.ne.s32.totalorder %s778_s7, %s587_s20  ;;  %p591_p0 = scmp.lt.u32.totalorder %s587_s20, %s778_s7 }
 0x1e4   :  { %p593_p1 = pnand %p591_p0, %p588_p13 }
 0x1e6   :  { %596 = shalt.err (!%p593_p1)
}
 0x1e7   :  { %413 = dma.vmem_to_hbm [thread:$0]  %s728_s27, 256, %s778_s7, [#allocation5], %s603_s13, %s603_s13, %s604_s14   ;;  %vm306_vm3 = vcmask 7168  }
 0x29a   :  { %v501_v38 = vpop.f32.mrb[2].mxu1 }
 0x29b   :  { %308 = vst.msk [vmem:[%s779_s8 + $0x8] sm:$0xff] %vm306_vm3, %v501_v38  ;;  %v297_v39 = vpop.f32.mrb[3].mxu1 }
 0x29c   :  { %307 = vst.msk [vmem:[%s779_s8] sm:$0xff] %vm306_vm3, %v297_v39 }
 0x2a2   :  { %v512_v40 = vpop.f32.mrb[4].mxu1 }
 0x2a3   :  { %389 = vst.msk [vmem:[%s780_s9 + $0x8] sm:$0xff] %vm306_vm3, %v512_v40  ;;  %v379_v41 = vpop.f32.mrb[5].mxu1 }
 0x2a4   :  { %388 = vst.msk [vmem:[%s780_s9] sm:$0xff] %vm306_vm3, %v379_v41 }
 0x2a5   :  { %597 = dma.done.wait [#allocation3], 256  }
 0x2a6   :  { %598 = vsyncadd [#allocation3], 4294967040 }
 0x2a7   :  { %599 = dma.done.wait [#allocation5], 256  }
 0x2a8   :  { %600 = vsyncadd [#allocation5], 4294967040 }
 0x2a9   :  { %428 = vsyncpa [#allocation3], 1 }
 0x2aa   :  { %429 = vsyncpa [#allocation5], 1 }

</bundles_post_ra>
